<compile_context>
chip_gen: v6e
topology: v6e:2x2x1
jax: 0.10.0
libtpu: 0.0.40
codegen_flags: <defaults>
</compile_context>

<pallas_src>
import jax
import jax.numpy as jnp
from jax.experimental import pallas as pl
from jax.experimental.pallas import tpu as pltpu

B = 8            # batch
IN_SIZE = 32     # input_size
OUT_SIZE = 8     # output_size (num classes)

_VMEM = pl.BlockSpec(memory_space=pltpu.VMEM)


# ---------------- kernels ----------------

def _linear_sigmoid_kernel(x_ref, wt_ref, b_ref, out_ref):
    # x: (B, IN), wt: (IN, OUT) pre-transposed, b: (1, OUT)
    logits = jnp.dot(x_ref[...], wt_ref[...], preferred_element_type=jnp.float32)
    out_ref[...] = jax.nn.sigmoid(logits + b_ref[...])   # logistic -> EUP, no f32 divide


def _loss_only_kernel(x_ref, wt_ref, b_ref, y_ref, loss_ref):
    # Fused linear -> sigmoid -> softmax cross-entropy (class-index targets), mean
    # over batch. Emits ONLY the (1,1) loss; y_pred never leaves vregs.
    logits = jnp.dot(x_ref[...], wt_ref[...], preferred_element_type=jnp.float32)
    p = jax.nn.sigmoid(logits + b_ref[...])                           # (B, OUT)

    # p in [0, 1] => exp(p) in [1, e]; no max-subtraction needed for stability.
    lse = jnp.log(jnp.sum(jnp.exp(p), axis=-1, keepdims=True))        # (B, 1)
    classes = jax.lax.broadcasted_iota(jnp.int32, p.shape, 1)         # (B, OUT)
    target_mask = classes == y_ref[...]                               # (B,1) bcast -> (B,OUT)
    p_target = jnp.sum(jnp.where(target_mask, p, 0.0), axis=-1, keepdims=True)
    nll = lse - p_target                                              # (B, 1) = -log_softmax[y]
    loss_ref[0, 0] = jnp.sum(nll) * (1.0 / nll.shape[0])


# ---------------- jitted wrappers ----------------

def prepare_params(w, b):
    """One-time layout plumbing: (OUT, IN) -> (IN, OUT), (OUT,) -> (1, OUT)."""
    return w.T, b.reshape(1, -1)


def prepare_targets(y):
    """One-time: class indices (B,) -> (B, 1) int32 for in-kernel one-hot mask."""
    return y.reshape(-1, 1).astype(jnp.int32)


@jax.jit
def predict(x, wt, b2d):
    """Inference path: sigmoid(linear(x)) — one launch, one jitted executable."""
    return pl.pallas_call(
        _linear_sigmoid_kernel,
        out_shape=jax.ShapeDtypeStruct((x.shape[0], wt.shape[1]), jnp.float32),
        in_specs=[_VMEM, _VMEM, _VMEM],
        out_specs=_VMEM,
    )(x, wt, b2d)


@jax.jit
def ce_loss(x, wt, b2d, y2d):
    """Training path: scalar CE loss only — no y_pred writeback."""
    loss11 = pl.pallas_call(
        _loss_only_kernel,
        out_shape=jax.ShapeDtypeStruct((1, 1), jnp.float32),
        in_specs=[_VMEM, _VMEM, _VMEM, _VMEM],
        out_specs=_VMEM,
    )(x, wt, b2d, y2d)
    return loss11[0, 0]   # slice folded into the same jitted graph


def torch_model_forward(x, w, b, y=None):
    """Equivalent of TorchModel.forward: y_pred if y is None, else CE loss.

    For repeated calls, hoist prepare_params / prepare_targets and call
    predict / ce_loss directly.
    """
    wt, b2d = prepare_params(w, b)
    if y is None:
        return predict(x, wt, b2d)
    return ce_loss(x, wt, b2d, prepare_targets(y))


# ---------------- main ----------------

if __name__ == "__main__":
    key = jax.random.PRNGKey(0)
    kx, kw, kb, ky = jax.random.split(key, 4)

    # Parameters with nn.Linear(input_size, output_size) shapes.
    bound = 1.0 / (IN_SIZE ** 0.5)
    w = jax.random.uniform(kw, (OUT_SIZE, IN_SIZE), jnp.float32, -bound, bound)
    b = jax.random.uniform(kb, (OUT_SIZE,), jnp.float32, -bound, bound)

    x = jax.random.normal(kx, (B, IN_SIZE), jnp.float32)
    y = jax.random.randint(ky, (B,), 0, OUT_SIZE, jnp.int32)

    # One-time layout prep (hoisted out of the per-call path).
    wt, b2d = prepare_params(w, b)
    y2d = prepare_targets(y)

    # Inference path (y=None): sigmoid(linear(x)).
    y_pred = predict(x, wt, b2d)
    jax.block_until_ready(y_pred)

    # Training path: scalar loss only (module-faithful forward(x, y)).
    loss = ce_loss(x, wt, b2d, y2d)
    jax.block_until_ready(loss)

    # Module-style convenience API (same jitted kernels underneath).
    y_pred2 = torch_model_forward(x, w, b)
    loss2 = torch_model_forward(x, w, b, y)
    jax.block_until_ready(loss2)

    # Reference in plain JAX.
    ref_pred = jax.nn.sigmoid(x @ w.T + b)
    ref_loss = jnp.mean(
        -jnp.sum(jax.nn.one_hot(y, OUT_SIZE) * jax.nn.log_softmax(ref_pred, axis=-1), axis=-1)
    )

    assert jnp.allclose(y_pred, ref_pred, atol=1e-5), "y_pred mismatch"
    assert jnp.allclose(y_pred2, ref_pred, atol=1e-5), "wrapper y_pred mismatch"
    assert jnp.allclose(loss, ref_loss, atol=1e-5), "loss mismatch"
    assert jnp.allclose(loss2, ref_loss, atol=1e-5), "wrapper loss mismatch"

    print("KERNEL_OK")
</pallas_src>

<mosaic_0001>
module attributes {stable_mosaic.version = 11 : i64} {
  func.func @_linear_sigmoid_kernel(%arg0: memref<8x32xf32, #tpu.memory_space<vmem>>, %arg1: memref<32x8xf32, #tpu.memory_space<vmem>>, %arg2: memref<1x8xf32, #tpu.memory_space<vmem>>, %arg3: memref<8x8xf32, #tpu.memory_space<vmem>>) attributes {dimension_semantics = [], scalar_prefetch = 0 : i64, scratch_operands = 0 : i64, tpu.core_type = #tpu.core_type<tc>} {
    %c0 = arith.constant 0 : index
    %c0_0 = arith.constant 0 : index
    %0 = vector.load %arg0[%c0, %c0_0] : memref<8x32xf32, #tpu.memory_space<vmem>>, vector<8x32xf32>
    %c0_1 = arith.constant 0 : index
    %c0_2 = arith.constant 0 : index
    %1 = vector.load %arg1[%c0_1, %c0_2] : memref<32x8xf32, #tpu.memory_space<vmem>>, vector<32x8xf32>
    %cst = arith.constant dense<0.000000e+00> : vector<8x8xf32>
    %2 = tpu.matmul %0, %1, %cst {dimension_numbers = #tpu.dot_dimension_numbers<[1], [0], [0], [1], [0, 0, 1, 1], [], []>} : vector<8x32xf32>, vector<32x8xf32>, vector<8x8xf32> -> vector<8x8xf32>
    %c0_3 = arith.constant 0 : index
    %c0_4 = arith.constant 0 : index
    %3 = vector.load %arg2[%c0_3, %c0_4] : memref<1x8xf32, #tpu.memory_space<vmem>>, vector<1x8xf32>
    %4 = vector.broadcast %3 : vector<1x8xf32> to vector<8x8xf32>
    %5 = arith.addf %2, %4 : vector<8x8xf32>
    %6 = arith.negf %5 : vector<8x8xf32>
    %7 = math.exp %6 : vector<8x8xf32>
    %cst_5 = arith.constant 1.000000e+00 : f32
    %8 = vector.broadcast %cst_5 : f32 to vector<8x8xf32>
    %9 = arith.addf %8, %7 : vector<8x8xf32>
    %10 = arith.divf %8, %9 : vector<8x8xf32>
    %c0_6 = arith.constant 0 : index
    %c0_7 = arith.constant 0 : index
    %11 = vector.load %arg3[%c0_6, %c0_7] : memref<8x8xf32, #tpu.memory_space<vmem>>, vector<8x8xf32>
    tpu.vector_store %arg3[%c0_6, %c0_7], %10 {strides = array<i32>} : memref<8x8xf32, #tpu.memory_space<vmem>>, vector<8x8xf32>,
    return
  }
}

</mosaic_0001>

<bundles_post_ra>
// kernel: predict.1
= control target key start
LH: loop header
LB: loop body
LE: loop exit
PB: predicated region body
PF: predicated region fallthrough
CT: control target
= control target key end

     0   :  { %v171_v1 = vmov 0.0   ;;  %vm172_vm0 = vmmov 0   ;;  %s215_s0 = inlined_call_operand.vmem [shape: f32[8,32], index: 0, kind: input, shape index: {}]   ;;  %s216_s1 = inlined_call_operand.vmem [shape: f32[32,8], index: 1, kind: input, shape index: {}]   ;;  %s217_s2 = inlined_call_operand.vmem [shape: f32[1,8], index: 2, kind: input, shape index: {}]   ;;  %s218_s3 = inlined_call_operand.hbm [shape: f32[8,8], index: 3, kind: output, shape index: {}]  }
   0x1   :  { %v19_v0 = vld [vmem:[%s216_s1 + $0x18] sm:$0xff]  ;;  %131 = vmatprep.subr.mxu0 %v171_v1  ;;  %v18_v2 = vld [vmem:[%s216_s1 + $0x10] sm:$0xff]  ;;  %139 = vmatprep.mubr.msk.f32.mxu0 %vm172_vm0, %v171_v1 }
   0x2   :  { %132 = vmatpush3.msra.mxu0 %v19_v0 }
   0x3   :  { %8 = vsyncpa [#allocation3], 0  ;;  %133 = vmatprep.subr.mxu0 %v171_v1  ;;  %v17_v3 = vld [vmem:[%s216_s1 + $0x8] sm:$0xff]  ;;  %v16_v4 = vld [vmem:[%s216_s1] sm:$0xff]  ;;  %vm27_vm1 = vcmask 261120   ;;  %s173_s1 = smov [#allocation2]  }
   0x4   :  { %134 = vmatpush3.msra.mxu0 %v18_v2  ;;  %v15_v5 = vld [vmem:[%s215_s0] sm:$0xff]  ;;  %s115_s24 = sshll.u32 %s173_s1, 4  ;;  %vm107_vm2 = vcmask 64512   ;;  %s116_s24 = int_to_ptr.vmem [resolvable:$true] %s115_s24 }
   0x5   :  { %135 = vmatprep.subr.mxu0 %v171_v1  ;;  %v123_v6 = vld [vmem:[%s217_s2] ss:$0 sm:$0xff]  ;;  %s149_s0 = scalar_lea.vmem %s116_s24, 128  ;;  %p154_p1 = scmp.lt.s32.totalorder %s116_s24, %s116_s24 }
   0x6   :  { %136 = vmatpush3.msra.mxu0 %v17_v3  ;;  %p150_p0 = scmp.ne.s32.totalorder %s116_s24, %s149_s0  ;;  %p155_p2 = scmp.lt.s32.totalorder %s149_s0, %s149_s0 }
   0x7   :  { %137 = vmatprep.subr.mxu0 %v171_v1 }
   0x8   :  { %138 = vmatpush3.msra.mxu0 %v16_v4  ;;  %p156_p3 = por %p155_p2, %p154_p1 }
   0x9   :  { %140 = vmatmul.mubr.msk.f32.vlgmr.msra.gmra.mxu0 %vm27_vm1, %v15_v5 }
   0xa   :  { %p157_p4 = pnand %p156_p3, %p150_p0 }
  0xc9   :  { %v97_v7 = vpop.f32.mrf.mxu0 }
  0xca   :  { %v98_v8 = vadd.f32 %v123_v6, %v97_v7 }
  0xcb   :  { %v141_v9 = vpop.f32.mrf.mxu0 }
  0xcc   :  { %v125_v10 = vmul.f32 -1.442695, %v98_v8 }
  0xce   :  { %145 = vpow2.f32 %v125_v10 }
  0xdb   :  { %v146_v11 = vpop.eup %145 }
  0xdc   :  { %v104_v12 = vadd.f32 1.0, %v146_v11 }
  0xde   :  { %147 = vrcp.f32 %v104_v12 }
  0xeb   :  { %v148_v13 = vpop.eup %147 }
  0xec   :  { %108 = vst.msk [vmem:[#allocation2] sm:$0xff] %vm107_vm2, %v148_v13 }
  0xed   :  { %160 = shalt.err (!%p157_p4)
}
  0xee   :  { %118 = dma.vmem_to_hbm [thread:$0]  %s116_s24, 128, %s218_s3, [#allocation3]  }
  0xef   :  { %169 = dma.done.wait [#allocation3], 128  }
  0xf0   :  { %170 = vsyncadd [#allocation3], 4294967168 }
  0xf1   :  { %122 = vsyncpa [#allocation3], 1 }

</bundles_post_ra>
